<compile_context>
chip_gen: v7x
topology: tpu7x:2x2x1
jax: 0.10.0
libtpu: 0.0.40
codegen_flags: <defaults>
</compile_context>

<pallas_src>
import functools

import numpy as np
import jax
import jax.numpy as jnp
from jax.experimental import pallas as pl
from jax.experimental.pallas import tpu as pltpu


# ---------------------------------------------------------------------------
# Constant builders (deterministic "parameters" of the module)
# ---------------------------------------------------------------------------
def _round_up(x: int, m: int) -> int:
    return ((x + m - 1) // m) * m


def _hamming_window_periodic(win_length: int) -> np.ndarray:
    # torch.hamming_window(win_length, periodic=True)
    n = np.arange(win_length, dtype=np.float64)
    return 0.54 - 0.46 * np.cos(2.0 * np.pi * n / win_length)


def _hz_to_mel_htk(f):
    return 2595.0 * np.log10(1.0 + np.asarray(f, dtype=np.float64) / 700.0)


def _mel_to_hz_htk(m):
    return 700.0 * (10.0 ** (np.asarray(m, dtype=np.float64) / 2595.0) - 1.0)


def _melscale_fbanks(n_freqs, f_min, f_max, n_mels, sample_rate) -> np.ndarray:
    # Replicates torchaudio.functional.melscale_fbanks (htk scale, norm=None).
    all_freqs = np.linspace(0.0, sample_rate / 2.0, n_freqs)
    m_pts = np.linspace(_hz_to_mel_htk(f_min), _hz_to_mel_htk(f_max), n_mels + 2)
    f_pts = _mel_to_hz_htk(m_pts)
    f_diff = f_pts[1:] - f_pts[:-1]                       # (n_mels + 1,)
    slopes = f_pts[None, :] - all_freqs[:, None]          # (n_freqs, n_mels + 2)
    down = -slopes[:, :-2] / f_diff[:-1]                  # (n_freqs, n_mels)
    up = slopes[:, 2:] / f_diff[1:]                       # (n_freqs, n_mels)
    fb = np.maximum(0.0, np.minimum(down, up))
    return fb.astype(np.float32)


def _windowed_dft_mats(n_fft: int, win_length: int, n_keep: int):
    # Hamming (periodic) window, zero-padded & centered to n_fft (as torch.stft),
    # folded into a DFT basis truncated to the first n_keep frequency bins.
    win = _hamming_window_periodic(win_length)
    pad_left = (n_fft - win_length) // 2
    pad_right = n_fft - win_length - pad_left
    win_full = np.pad(win, (pad_left, pad_right))

    n = np.arange(n_fft, dtype=np.float64)[:, None]       # (n_fft, 1)
    k = np.arange(n_keep, dtype=np.float64)[None, :]      # (1, n_keep)
    ang = 2.0 * np.pi * n * k / n_fft
    cos_mat = (win_full[:, None] * np.cos(ang)).astype(np.float32)  # (n_fft, n_keep)
    sin_mat = (win_full[:, None] * np.sin(ang)).astype(np.float32)  # (n_fft, n_keep)
    return cos_mat, sin_mat


# ---------------------------------------------------------------------------
# Pallas kernel: frame packing -> windowed DFT -> power -> mel -> log
# ---------------------------------------------------------------------------
def _logmel_kernel(slab_ref, w_ref, fb_ref, out_ref, *, tT, C, hop, n_fft,
                   n_keep, eps):
    # slab_ref: (tT + C - 1, chunk_w) bf16 -- hop-sized, zero-lane-padded chunks.
    # Frame i of this tile = chunks i .. i+C-1, i.e. slab rows i..i+C-1.
    slab = slab_ref[...]

    # Dense frame matrix (tT, n_fft): value-level shifted sublane slices plus a
    # lane concatenate (XLU work, no MXU / no per-step cast).
    parts = []
    for j in range(C):                       # C = ceil(n_fft / hop), small
        width = min(hop, n_fft - j * hop)
        parts.append(slab[j:j + tT, :width])
    frames = jnp.concatenate(parts, axis=-1)             # (tT, n_fft) bf16

    # Single fused windowed-DFT matmul: K = n_fft (full MXU K passes),
    # N = 2*n_keep (cos | sin), f32 accumulation.
    spec = jnp.dot(frames, w_ref[...],
                   preferred_element_type=jnp.float32)    # (tT, 2*n_keep) f32

    real = spec[:, :n_keep]                  # 128-aligned splits -> free views
    imag = spec[:, n_keep:]
    power = real * real + imag * imag        # |X|^2  (power = 2.0)
    mel = jnp.dot(power, fb_ref[...],
                  preferred_element_type=jnp.float32)     # (tT, n_mels) f32
    # Store a lane-dense (n_mels, tT) block; small transpose runs on the XLU.
    out_ref[...] = jnp.log(mel + eps).T


def log_mel_spec(x, *, sr, n_fft, hop_length, n_mels, win_length=400,
                 f_min=20.0, f_max=7600.0, eps=1e-6):
    """x: (B, L) float32 waveform -> (B, n_mels, n_frames) float32 log-mel."""
    B, L = x.shape
    n_freqs = n_fft // 2 + 1
    pad = n_fft // 2
    if L <= pad:
        raise ValueError("reflect padding (center=True) requires L > n_fft // 2")

    T = 1 + L // hop_length            # torch.stft(center=True) frame count
    C = pl.cdiv(n_fft, hop_length)     # hop-chunks spanned by one frame

    # ---- constants ---------------------------------------------------------
    fb_full = _melscale_fbanks(n_freqs, f_min, f_max, n_mels, sr)
    nz = np.nonzero(np.any(fb_full != 0.0, axis=1))[0]
    last_nz = int(nz[-1]) if nz.size else 0
    # Drop trailing all-zero filterbank rows, rounded up to a 128-lane multiple
    # (257 -> 256 for sr=16k, f_max=7600).  Bit-exact by construction; assert it.
    n_keep = min(n_freqs, _round_up(last_nz + 1, 128))
    assert not np.any(fb_full[n_keep:]), "truncated filterbank rows must be zero"
    fb = jnp.asarray(fb_full[:n_keep])                              # (n_keep, n_mels) f32

    cos_mat, sin_mat = _windowed_dft_mats(n_fft, win_length, n_keep)
    w = jnp.asarray(np.concatenate([cos_mat, sin_mat], axis=1),
                    dtype=jnp.bfloat16)                             # (n_fft, 2*n_keep)

    # ---- time (frame) tiling ----------------------------------------------
    if T <= 512:
        tT = _round_up(T, 8)           # single tile; block == full padded dim
    else:
        tT = 512                       # multiple of 128 -> lane-legal out blocks
    n_t = pl.cdiv(T, tT)
    T_pad = n_t * tT
    slab_rows = tT + C - 1
    chunk_w = _round_up(hop_length, 128)        # lane-dense chunk rows (160->256)

    # ---- waveform glue: reflect pad, hop-chunks (bf16, lane-padded), slabs --
    xp = jnp.pad(x.astype(jnp.float32), ((0, 0), (pad, pad)), mode="reflect")
    n_chunks = T_pad + C - 1
    need = n_chunks * hop_length
    cur = xp.shape[1]
    if need > cur:
        xp = jnp.pad(xp, ((0, 0), (0, need - cur)))
    else:
        xp = xp[:, :need]
    chunks = xp.reshape(B, n_chunks, hop_length).astype(jnp.bfloat16)
    chunks = jnp.pad(chunks, ((0, 0), (0, 0), (0, chunk_w - hop_length)))
    # Per-tile slabs (tiles overlap by C-1 chunk rows => ~0.6% duplication);
    # lets the normal BlockSpec pipeline prefetch/double-buffer the slab DMA.
    slabs = jnp.stack(
        [chunks[:, t * tT:t * tT + slab_rows] for t in range(n_t)], axis=1
    )                                                   # (B, n_t, slab_rows, chunk_w)

    kernel = functools.partial(_logmel_kernel, tT=tT, C=C, hop=hop_length,
                               n_fft=n_fft, n_keep=n_keep, eps=eps)

    out = pl.pallas_call(
        kernel,
        out_shape=jax.ShapeDtypeStruct((B, n_mels, T_pad), jnp.float32),
        grid_spec=pltpu.PrefetchScalarGridSpec(
            num_scalar_prefetch=0,
            grid=(B, n_t),
            in_specs=[
                pl.BlockSpec((None, None, slab_rows, chunk_w),
                             lambda b, t: (b, t, 0, 0)),            # chunk slab
                pl.BlockSpec((n_fft, 2 * n_keep), lambda b, t: (0, 0)),   # DFT weights
                pl.BlockSpec((n_keep, n_mels), lambda b, t: (0, 0)),      # mel fbanks
            ],
            out_specs=pl.BlockSpec((None, n_mels, tT), lambda b, t: (b, 0, t)),
        ),
        compiler_params=pltpu.CompilerParams(
            dimension_semantics=("parallel", "parallel")),
    )(slabs, w, fb)

    return out[:, :, :T]               # drop padded frames


# ---------------------------------------------------------------------------
# Pure-JAX f32 reference (straightforward framing + full 257-bin DFT)
# ---------------------------------------------------------------------------
def _log_mel_spec_reference(x, *, sr, n_fft, hop_length, n_mels, win_length=400,
                            f_min=20.0, f_max=7600.0, eps=1e-6):
    B, L = x.shape
    n_freqs = n_fft // 2 + 1
    cos_mat, sin_mat = _windowed_dft_mats(n_fft, win_length, n_freqs)
    fb = jnp.asarray(_melscale_fbanks(n_freqs, f_min, f_max, n_mels, sr))
    pad = n_fft // 2
    xp = jnp.pad(x.astype(jnp.float32), ((0, 0), (pad, pad)), mode="reflect")
    T = 1 + L // hop_length
    idx = jnp.arange(T)[:, None] * hop_length + jnp.arange(n_fft)[None, :]
    frames = xp[:, idx]                                             # (B, T, n_fft)
    real = jnp.einsum("btn,nk->btk", frames, jnp.asarray(cos_mat))
    imag = jnp.einsum("btn,nk->btk", frames, jnp.asarray(sin_mat))
    power = real * real + imag * imag
    mel = jnp.einsum("btk,km->btm", power, fb)
    return jnp.transpose(jnp.log(mel + eps), (0, 2, 1))


if __name__ == "__main__":
    # Module-consistent small shapes: sr=16000, n_fft=512 (>= win_length=400),
    # hop=160, n_mels=64; 0.1 s of audio per example.
    sr, n_fft, hop_length, n_mels = 16000, 512, 160, 64
    B, L = 2, 1600

    key = jax.random.PRNGKey(0)
    x = jax.random.normal(key, (B, L), dtype=jnp.float32)

    y = log_mel_spec(x, sr=sr, n_fft=n_fft, hop_length=hop_length, n_mels=n_mels)
    jax.block_until_ready(y)

    T = 1 + L // hop_length
    assert y.shape == (B, n_mels, T), y.shape
    assert bool(jnp.all(jnp.isfinite(y)))

    # Cross-check vs the f32 reference (kernel uses bf16 MXU inputs, so compare
    # in the linear mel domain with a loose relative tolerance).
    y_ref = _log_mel_spec_reference(x, sr=sr, n_fft=n_fft,
                                    hop_length=hop_length, n_mels=n_mels)
    mel_k, mel_r = jnp.exp(y), jnp.exp(y_ref)
    assert bool(jnp.allclose(mel_k, mel_r, rtol=0.1, atol=0.5)), (
        "kernel/reference mismatch: max log diff "
        f"{float(jnp.max(jnp.abs(y - y_ref)))}")

    print("KERNEL_OK")
</pallas_src>

<mosaic_0001>
module attributes {stable_mosaic.version = 11 : i64} {
  func.func @_logmel_kernel(%arg0: i32, %arg1: i32, %arg2: memref<1x1x19x256xbf16, #tpu.memory_space<vmem>>, %arg3: memref<512x512xbf16, #tpu.memory_space<vmem>>, %arg4: memref<256x64xf32, #tpu.memory_space<vmem>>, %arg5: memref<1x64x16xf32, #tpu.memory_space<vmem>>) attributes {dimension_semantics = [#tpu.dimension_semantics<parallel>, #tpu.dimension_semantics<parallel>], iteration_bounds = array<i64: 2, 1>, scalar_prefetch = 0 : i64, scratch_operands = 0 : i64, tpu.core_type = #tpu.core_type<tc>, window_params = [{transform_indices = @transform_0, window_bounds = array<i64: 1, 1, 19, 256>}, {pipeline_mode = #tpu.pipeline_mode<synchronous>, transform_indices = @transform_1, window_bounds = array<i64: 512, 512>}, {pipeline_mode = #tpu.pipeline_mode<synchronous>, transform_indices = @transform_2, window_bounds = array<i64: 256, 64>}, {transform_indices = @transform_3, window_bounds = array<i64: 1, 64, 16>}]} {
    %c0 = arith.constant 0 : index
    %c0_0 = arith.constant 0 : index
    %c0_1 = arith.constant 0 : index
    %c0_2 = arith.constant 0 : index
    %0 = vector.load %arg2[%c0, %c0_0, %c0_1, %c0_2] : memref<1x1x19x256xbf16, #tpu.memory_space<vmem>>, vector<1x1x19x256xbf16>
    %1 = vector.shape_cast %0 : vector<1x1x19x256xbf16> to vector<19x256xbf16>
    %2 = vector.extract_strided_slice %1 {offsets = [0, 0], sizes = [16, 160], strides = [1, 1]} : vector<19x256xbf16> to vector<16x160xbf16>
    %3 = vector.extract_strided_slice %1 {offsets = [1, 0], sizes = [16, 160], strides = [1, 1]} : vector<19x256xbf16> to vector<16x160xbf16>
    %4 = vector.extract_strided_slice %1 {offsets = [2, 0], sizes = [16, 160], strides = [1, 1]} : vector<19x256xbf16> to vector<16x160xbf16>
    %5 = vector.extract_strided_slice %1 {offsets = [3, 0], sizes = [16, 32], strides = [1, 1]} : vector<19x256xbf16> to vector<16x32xbf16>
    %6 = tpu.concatenate %2, %3, %4, %5 in 1 : vector<16x160xbf16>, vector<16x160xbf16>, vector<16x160xbf16>, vector<16x32xbf16> -> vector<16x512xbf16>
    %c0_3 = arith.constant 0 : index
    %c0_4 = arith.constant 0 : index
    %7 = vector.load %arg3[%c0_3, %c0_4] : memref<512x512xbf16, #tpu.memory_space<vmem>>, vector<512x512xbf16>
    %cst = arith.constant dense<0.000000e+00> : vector<16x512xf32>
    %8 = tpu.matmul %6, %7, %cst {dimension_numbers = #tpu.dot_dimension_numbers<[1], [0], [0], [1], [0, 0, 1, 1], [], []>} : vector<16x512xbf16>, vector<512x512xbf16>, vector<16x512xf32> -> vector<16x512xf32>
    %9 = vector.extract_strided_slice %8 {offsets = [0, 0], sizes = [16, 256], strides = [1, 1]} : vector<16x512xf32> to vector<16x256xf32>
    %10 = vector.extract_strided_slice %8 {offsets = [0, 256], sizes = [16, 256], strides = [1, 1]} : vector<16x512xf32> to vector<16x256xf32>
    %11 = arith.mulf %9, %9 : vector<16x256xf32>
    %12 = arith.mulf %10, %10 : vector<16x256xf32>
    %13 = arith.addf %11, %12 : vector<16x256xf32>
    %c0_5 = arith.constant 0 : index
    %c0_6 = arith.constant 0 : index
    %14 = vector.load %arg4[%c0_5, %c0_6] : memref<256x64xf32, #tpu.memory_space<vmem>>, vector<256x64xf32>
    %cst_7 = arith.constant dense<0.000000e+00> : vector<16x64xf32>
    %15 = tpu.matmul %13, %14, %cst_7 {dimension_numbers = #tpu.dot_dimension_numbers<[1], [0], [0], [1], [0, 0, 1, 1], [], []>} : vector<16x256xf32>, vector<256x64xf32>, vector<16x64xf32> -> vector<16x64xf32>
    %cst_8 = arith.constant 9.99999997E-7 : f32
    %16 = vector.broadcast %cst_8 : f32 to vector<16x64xf32>
    %17 = arith.addf %15, %16 : vector<16x64xf32>
    %18 = math.log %17 : vector<16x64xf32>
    %19 = tpu.transpose %18, [1, 0] : vector<16x64xf32> -> vector<64x16xf32>
    %c0_9 = arith.constant 0 : index
    %c0_10 = arith.constant 0 : index
    %c0_11 = arith.constant 0 : index
    %20 = vector.load %arg5[%c0_9, %c0_10, %c0_11] : memref<1x64x16xf32, #tpu.memory_space<vmem>>, vector<1x64x16xf32>
    %21 = vector.shape_cast %20 : vector<1x64x16xf32> to vector<64x16xf32>
    %22 = vector.shape_cast %19 : vector<64x16xf32> to vector<1x64x16xf32>
    tpu.vector_store %arg5[%c0_9, %c0_10, %c0_11], %22 {strides = array<i32>} : memref<1x64x16xf32, #tpu.memory_space<vmem>>, vector<1x64x16xf32>,
    return
  }
  func.func @transform_0(%arg0: i32, %arg1: i32) -> (i32, i32, i32, i32) {
    %c0_i32 = arith.constant 0 : i32
    %c0_i32_0 = arith.constant 0 : i32
    %c0_i32_1 = arith.constant 0 : i32
    return %arg0, %arg1, %c0_i32, %c0_i32_0 : i32, i32, i32, i32
  }
  func.func @transform_1(%arg0: i32, %arg1: i32) -> (i32, i32) {
    %c0_i32 = arith.constant 0 : i32
    %c0_i32_0 = arith.constant 0 : i32
    %c0_i32_1 = arith.constant 0 : i32
    return %c0_i32, %c0_i32_0 : i32, i32
  }
  func.func @transform_2(%arg0: i32, %arg1: i32) -> (i32, i32) {
    %c0_i32 = arith.constant 0 : i32
    %c0_i32_0 = arith.constant 0 : i32
    %c0_i32_1 = arith.constant 0 : i32
    return %c0_i32, %c0_i32_0 : i32, i32
  }
  func.func @transform_3(%arg0: i32, %arg1: i32) -> (i32, i32, i32) {
    %c0_i32 = arith.constant 0 : i32
    %c0_i32_0 = arith.constant 0 : i32
    return %arg0, %c0_i32, %arg1 : i32, i32, i32
  }
}

</mosaic_0001>

<bundles_post_ra>
// kernel: tpu_custom_call.1
= control target key start
LH: loop header
LB: loop body
LE: loop exit
PB: predicated region body
PF: predicated region fallthrough
CT: control target
= control target key end

     0   :  { %8 = vsyncpa [#allocation3], 0  ;;  %s2074_s12 = smov 0   ;;  %s2076_s13 = smov 0   ;;  %s2286_s0 = inlined_call_operand.vmem [shape: bf16[2,1,19,256], index: 0, kind: input, shape index: {}]   ;;  %s2287_s1 = inlined_call_operand.hbm [shape: bf16[512,512], index: 1, kind: input, shape index: {}]   ;;  %s2288_s2 = inlined_call_operand.vmem [shape: f32[256,64], index: 2, kind: input, shape index: {}]   ;;  %s2289_s3 = inlined_call_operand.vmem [shape: f32[2,64,16], index: 3, kind: output, shape index: {}]  }
   0x1   :  { %s2078_s14 = smov 0  }
   0x2 LB: > { %s1510_s15 = sadd.s32 4294967295, %s2046_s14   ;;  %s26_s16 = sadd.s32 1, %s2042_s13  ;;  %s2046_s14 = sphi %s2078_s14, %s14_s14   ;;  %s2042_s13 = sphi %s2076_s13, %s2299_s13   ;;  %s2038_s12 = sphi %s2074_s12, %s2298_s12  }
   0x3   : > { %p28_p0 = scmp.ge.s32.totalorder %s26_s16, 2  ;;  %p1512_p1 = scmp.ge.s32.totalorder %s2046_s14, 1 }
   0x4   : > { %p129_p2 = scmp.lt.s32.totalorder %s2046_s14, 3  ;;  %p2099_p4 = scmp.eq.s32.totalorder %s1510_s15, 0 }
   0x5   : > { %s2301_s16 = smov (%p28_p0, %s26_s16), 0  ;;  %s2048_s19 = smov [#allocation2]  }
   0x6   : > { %p2095_p3 = pnand %p1512_p1, %p129_p2  ;;  %s141_s20 = sshll.u32 %s2048_s19, 4  ;;  %s142_s20 = int_to_ptr.vmem [resolvable:$true] %s141_s20 }
   0x7   : > { %s2294_s18 = scalar_select %p2099_p4, 1, 0 }
   0x8   : > { %s2293_s17 = scalar_select %p2095_p3, 1, 0 }
   0x9   : > { %p1754_p5 = pneg %p2095_p3  ;;  %s1992_s24 = scalar_lea.hbm %s2287_s1, 16384 }
   0xa   : > { %p1993_p7 = scmp.ne.s32.totalorder %s2287_s1, %s1992_s24  ;;  %p1999_p11 = scmp.lt.u32.totalorder %s1992_s24, %s2287_s1 }
   0xb   : > { %p2107_p6 = pnand %p2099_p4, %p1754_p5 }
   0xd   : > { %p1994_p8 = pneg %p2107_p6 }
   0xf   : > { %p1995_p9 = pnand %p1994_p8, %p1993_p7 }
  0x11   : > { %p1996_p10 = pneg %p1995_p9 }
  0x13   : > { %p2001_p12 = pnand %p1999_p11, %p1996_p10 }
  0x15   : > { %2004 = shalt.err (!%p2001_p12)
}
  0x16   : > { %s2005_s29 = scalar_lea.vmem %s142_s20, 16384  ;;  %p2013_p2 = scmp.lt.s32.totalorder %s142_s20, %s142_s20 }
  0x17   : > { %p2006_p13 = scmp.ne.s32.totalorder %s142_s20, %s2005_s29  ;;  %p2014_p5 = scmp.lt.s32.totalorder %s2005_s29, %s2005_s29 }
  0x19   : > { %p2008_p0 = pnand %p2006_p13, %p1994_p8  ;;  %p2015_p4 = por %p2014_p5, %p2013_p2 }
  0x1b   : > { %p2009_p1 = pneg %p2008_p0 }
  0x1d   : > { %p2016_p3 = pnand %p2015_p4, %p2009_p1 }
  0x1f   : > { %2019 = shalt.err (!%p2016_p3)
}
  0x20   : > { %s2049_s30 = smov 256   ;;  %s2050_s4 = smov 16  }
  0x21   : > { %1757 = dma.hbm_to_vmem [thread:$0]  (!%p2107_p6), %s2287_s1, 16384, %s142_s20, [#allocation3], %s2049_s30, %s2049_s30, %s2050_s4  }
  0x22   : > { %p2296_p7 = scmp.ne.s32.totalorder %s2293_s17, 0 }
  0x23   : > { %p2297_p9 = scmp.ne.s32.totalorder (!%p2296_p7), %s2294_s18, 0 }
  0x24   : > { %172 = sbr.rel (%p2296_p7) target bundleno = 846 (0x34e), region = 32 }
  0x2b   : > { %2033 = dma.done.wait (%p2297_p9), [#allocation3], 16384  }
  0x2c   : > { %2035 = vsyncadd (%p2297_p9), [#allocation3], 4294950912  ;;  %p203_p3 = scmp.lt.s32.totalorder %s2038_s12, 1  ;;  %vm237_vm0 = vsmask.f32 7424  ;;  %vm268_vm1 = vcmask 1046528  }
  0x2d   : > { %v1796_v5 = vld [vmem:[#allocation2 + $0x4] ss:$16 sps:$4 sm:$0xff]   ;;  %v1798_v14 = vld [vmem:[#allocation2 + $0xc] ss:$16 sps:$4 sm:$0xff]   ;;  %v1800_v19 = vld [vmem:[#allocation2] ss:$16 sps:$4 sm:$0xff]  }
  0x2e   : > { %s2303_s12 = smov (!%p203_p3, %s2038_s12), 1  ;;  %1075 = vmatprep.subr.bf16.mxu0 %v1796_v5  ;;  %s2051_s11 = smov 64   ;;  %1161 = vmatprep.subr.bf16.mxu1 %v1798_v14  ;;  %v1801_v23 = vld [vmem:[#allocation2 + $0x8] ss:$16 sps:$4 sm:$0xff]   ;;  %v1802_v25 = vld [vmem:[#allocation2 + $0x24] ss:$16 sps:$4 sm:$0xff]  }
  0x2f   : > { %s1749_s7 = smul.u32 24, %s2303_s12  ;;  %1076 = vmatpush1.bf16.msra.mxu0 %v1800_v19  ;;  %v1804_v26 = vld [vmem:[#allocation2 + $0x2c] ss:$16 sps:$4 sm:$0xff]   ;;  %1162 = vmatpush1.bf16.msra.mxu1 %v1801_v23  ;;  %v1806_v29 = vld [vmem:[#allocation2 + $0x20] ss:$16 sps:$4 sm:$0xff]   ;;  %s2052_s15 = smov 32  }
  0x30   : > { %v1807_v30 = vld [vmem:[#allocation2 + $0x28] ss:$16 sps:$4 sm:$0xff]   ;;  %1077 = vmatprep.subr.bf16.mxu0 %v1802_v25  ;;  %1163 = vmatprep.subr.bf16.mxu1 %v1804_v26  ;;  %v1808_v33 = vld [vmem:[#allocation2 + $0x44] ss:$16 sps:$4 sm:$0xff]   ;;  %v1810_v37 = vld [vmem:[#allocation2 + $0x4c] ss:$16 sps:$4 sm:$0xff]  }
  0x31   : > { %s211_s10 = scalar_lea.vmem %s2286_s0, %s1749_s7  ;;  %v1812_v38 = vld [vmem:[#allocation2 + $0x40] ss:$16 sps:$4 sm:$0xff]   ;;  %v1813_v40 = vld [vmem:[#allocation2 + $0x48] ss:$16 sps:$4 sm:$0xff]   ;;  %v1814_v43 = vld [vmem:[#allocation2 + $0x64] ss:$16 sps:$4 sm:$0xff]  }
  0x32   : > { %v222_v0 = vld [vmem:[%s211_s10 + $0x10] sm:$0x33]  ;;  %v2141_v1 = vld [vmem:[%s211_s10 + $0x4] ss:$8 sps:$4 sm:$0xff]   ;;  %v2143_v4 = vld [vmem:[%s211_s10] ss:$8 sps:$4 sm:$0xff]  }
  0x33   : > { %v1522_v2 = vcombine.low %v222_v0, %v222_v0  ;;  %v1523_v3 = vcombine.high %v222_v0, %v222_v0  ;;  %v272_v6 = vrot.slane %v2141_v1, 1  ;;  %v251_v8 = vshrl.u32 %v2141_v1, 16  ;;  %1078 = vmatpush1.bf16.msra.mxu0 %v1806_v29  ;;  %1164 = vmatpush1.bf16.msra.mxu1 %v1807_v30  ;;  %v1816_v45 = vld [vmem:[#allocation2 + $0x6c] ss:$16 sps:$4 sm:$0xff]   ;;  %v1818_v46 = vld [vmem:[#allocation2 + $0x60] ss:$16 sps:$4 sm:$0xff]  }
  0x34   : > { %v253_v9 = vshll.u32 %v2141_v1, 16  ;;  %v239_v11 = vshrl.u32 %v2143_v4, 16  ;;  %v241_v12 = vshll.u32 %v2143_v4, 16  ;;  %v269_v17 = vrot.slane %v2143_v4, 1  ;;  %1079 = vmatprep.subr.bf16.mxu0 %v1808_v33  ;;  %1165 = vmatprep.subr.bf16.mxu1 %v1810_v37  ;;  %v1819_v48 = vld [vmem:[#allocation2 + $0x68] ss:$16 sps:$4 sm:$0xff]  }
  0x35   : > { %v273_v7 = vrot.slane %v1523_v3, 1  ;;  %v258_v10 = vshll.u32 %v1523_v3, 16  ;;  %v246_v13 = vshll.u32 %v1522_v2, 16  ;;  %v270_v18 = vrot.slane %v1522_v2, 1  ;;  %v1820_v49 = vld [vmem:[#allocation2 + $0x84] ss:$16 sps:$4 sm:$0xff]  }
  0x36   : > { %v255_v16 = vrot.slane %v253_v9, 1  ;;  %v243_v21 = vrot.slane %v241_v12, 1  ;;  %v282_v27 = vrot.slane %v239_v11, 1  ;;  %v283_v31 = vrot.slane %v241_v12, 2  ;;  %v1822_v50 = vld [vmem:[#allocation2 + $0x8c] ss:$16 sps:$4 sm:$0xff]  }
  0x37   : > { %v274_v15 = vsel %vm268_vm1, %v272_v6, %v273_v7  ;;  %v260_v20 = vrot.slane %v258_v10, 1  ;;  %v248_v22 = vrot.slane %v246_v13, 1  ;;  %v285_v34 = vshrl.u32 %v1522_v2, 16  ;;  %1080 = vmatpush1.bf16.msra.mxu0 %v1812_v38  ;;  %1166 = vmatpush1.bf16.msra.mxu1 %v1813_v40  ;;  %v1824_v51 = vld [vmem:[#allocation2 + $0x80] ss:$16 sps:$4 sm:$0xff]   ;;  %s2053_s17 = smov 96  }
  0x38   : > { %277 = vrot.lane.b32.xlu1 %v274_v15, %s2051_s11  ;;  %v256_v24 = vor.u32 %v255_v16, %v251_v8  ;;  %v244_v28 = vor.u32 %v243_v21, %v239_v11  ;;  %v288_v35 = vrot.slane %v246_v13, 2  ;;  %v271_v41 = vsel %vm268_vm1, %v269_v17, %v270_v18  ;;  %1081 = vmatprep.subr.bf16.mxu0 %v1814_v43  ;;  %v1825_v52 = vld [vmem:[#allocation2 + $0x88] ss:$16 sps:$4 sm:$0xff]   ;;  %v1826_v53 = vld [vmem:[#allocation2 + $0xa4] ss:$16 sps:$4 sm:$0xff]   ;;  %s1654_s9 = sshll.u32 %s2303_s12, 6 }
  0x39   : > { %v287_v39 = vrot.slane %v285_v34, 1  ;;  %v284_v42 = vor.u32 %v283_v31, %v282_v27  ;;  %vm281_vm2 = vsmask.f32 6400  ;;  %1167 = vmatprep.subr.bf16.mxu1 %v1816_v45  ;;  %v1828_v54 = vld [vmem:[#allocation2 + $0xac] ss:$16 sps:$4 sm:$0xff]   ;;  %vm266_vm3 = vcmask 261120  }
  0x3a   : > { %v261_v32 = vsel %vm237_vm0, %v256_v24, %v260_v20  ;;  %v249_v36 = vsel %vm237_vm0, %v244_v28, %v248_v22  ;;  %v1830_v55 = vld [vmem:[#allocation2 + $0xa0] ss:$16 sps:$4 sm:$0xff]   ;;  %v1831_v56 = vld [vmem:[#allocation2 + $0xa8] ss:$16 sps:$4 sm:$0xff]   ;;  %v1832_v57 = vld [vmem:[#allocation2 + $0xc4] ss:$16 sps:$4 sm:$0xff]  }
  0x3b   : > { %262 = vrot.lane.b32.xlu0 %v249_v36, %s2052_s15  ;;  %v289_v44 = vor.u32 %v288_v35, %v287_v39  ;;  %1082 = vmatpush1.bf16.msra.mxu0 %v1818_v46  ;;  %v1834_v58 = vld [vmem:[#allocation2 + $0xcc] ss:$16 sps:$4 sm:$0xff]   ;;  %v1836_v59 = vld [vmem:[#allocation2 + $0xc0] ss:$16 sps:$4 sm:$0xff]   ;;  %v1837_v60 = vld [vmem:[#allocation2 + $0xc8] ss:$16 sps:$4 sm:$0xff]  }
  0x3c   : > { %264 = vrot.lane.b32.xlu1 %v261_v32, %s2052_s15  ;;  %1168 = vmatpush1.bf16.msra.mxu1 %v1819_v48  ;;  %v1838_v61 = vld [vmem:[#allocation2 + $0xe4] ss:$16 sps:$4 sm:$0xff]   ;;  %v1840_v62 = vld [vmem:[#allocation2 + $0xec] ss:$16 sps:$4 sm:$0xff]   ;;  %v1842_v63 = vld [vmem:[#allocation2 + $0xe0] ss:$16 sps:$4 sm:$0xff]   ;;  %s219_s15 = scalar_lea.vmem %s2289_s3, %s1654_s9 }
  0x3d   : > { %v290_v47 = vsel %vm281_vm2, %v284_v42, %v289_v44  ;;  %1083 = vmatprep.subr.bf16.mxu0 %v1820_v49  ;;  %1169 = vmatprep.subr.bf16.mxu1 %v1822_v50  ;;  %v1843_v0 = vld [vmem:[#allocation2 + $0xe8] ss:$16 sps:$4 sm:$0xff]   ;;  %v1844_v2 = vld [vmem:[#allocation2 + $0x104] ss:$16 sps:$4 sm:$0xff]   ;;  %v1846_v3 = vld [vmem:[#allocation2 + $0x10c] ss:$16 sps:$4 sm:$0xff]  }
  0x3e   : > { %v1848_v5 = vld [vmem:[#allocation2 + $0x100] ss:$16 sps:$4 sm:$0xff]   ;;  %v1849_v6 = vld [vmem:[#allocation2 + $0x108] ss:$16 sps:$4 sm:$0xff]   ;;  %v1850_v7 = vld [vmem:[#allocation2 + $0x124] ss:$16 sps:$4 sm:$0xff]  }
  0x3f   : > { %275 = vrot.lane.b32.xlu0 %v271_v41, %s2051_s11  ;;  %1084 = vmatpush1.bf16.msra.mxu0 %v1824_v51  ;;  %v1852_v8 = vld [vmem:[#allocation2 + $0x12c] ss:$16 sps:$4 sm:$0xff]   ;;  %v1854_v9 = vld [vmem:[#allocation2 + $0x120] ss:$16 sps:$4 sm:$0xff]   ;;  %v1855_v10 = vld [vmem:[#allocation2 + $0x128] ss:$16 sps:$4 sm:$0xff]  }
  0x40   : > { %1170 = vmatpush1.bf16.msra.mxu1 %v1825_v52  ;;  %1085 = vmatprep.subr.bf16.mxu0 %v1826_v53  ;;  %v1856_v11 = vld [vmem:[#allocation2 + $0x144] ss:$16 sps:$4 sm:$0xff]   ;;  %v1858_v12 = vld [vmem:[#allocation2 + $0x14c] ss:$16 sps:$4 sm:$0xff]   ;;  %v1860_v13 = vld [vmem:[#allocation2 + $0x140] ss:$16 sps:$4 sm:$0xff]  }
  0x41   : > { %1171 = vmatprep.subr.bf16.mxu1 %v1828_v54  ;;  %v1861_v14 = vld [vmem:[#allocation2 + $0x148] ss:$16 sps:$4 sm:$0xff]   ;;  %v1862_v15 = vld [vmem:[#allocation2 + $0x164] ss:$16 sps:$4 sm:$0xff]   ;;  %v1864_v16 = vld [vmem:[#allocation2 + $0x16c] ss:$16 sps:$4 sm:$0xff]  }
  0x42   : > { %v1866_v17 = vld [vmem:[#allocation2 + $0x160] ss:$16 sps:$4 sm:$0xff]   ;;  %v1867_v18 = vld [vmem:[#allocation2 + $0x168] ss:$16 sps:$4 sm:$0xff]   ;;  %v1868_v19 = vld [vmem:[#allocation2 + $0x184] ss:$16 sps:$4 sm:$0xff]  }
  0x43   : > { %291 = vrot.lane.b32.xlu0 %v290_v47, %s2053_s17  ;;  %1086 = vmatpush1.bf16.msra.mxu0 %v1830_v55  ;;  %v1870_v20 = vld [vmem:[#allocation2 + $0x18c] ss:$16 sps:$4 sm:$0xff]   ;;  %v1872_v21 = vld [vmem:[#allocation2 + $0x180] ss:$16 sps:$4 sm:$0xff]   ;;  %v1873_v22 = vld [vmem:[#allocation2 + $0x188] ss:$16 sps:$4 sm:$0xff]  }
  0x44   : > { %1172 = vmatpush1.bf16.msra.mxu1 %v1831_v56  ;;  %1087 = vmatprep.subr.bf16.mxu0 %v1832_v57  ;;  %v1874_v23 = vld [vmem:[#allocation2 + $0x1a4] ss:$16 sps:$4 sm:$0xff]   ;;  %v1876_v24 = vld [vmem:[#allocation2 + $0x1ac] ss:$16 sps:$4 sm:$0xff]   ;;  %v1878_v25 = vld [vmem:[#allocation2 + $0x1a0] ss:$16 sps:$4 sm:$0xff]  }
  0x45   : > { %1173 = vmatprep.subr.bf16.mxu1 %v1834_v58  ;;  %v1879_v26 = vld [vmem:[#allocation2 + $0x1a8] ss:$16 sps:$4 sm:$0xff]   ;;  %v1880_v27 = vld [vmem:[#allocation2 + $0x1c4] ss:$16 sps:$4 sm:$0xff]   ;;  %v1882_v28 = vld [vmem:[#allocation2 + $0x1cc] ss:$16 sps:$4 sm:$0xff]  }
  0x46   : > { %v1884_v29 = vld [vmem:[#allocation2 + $0x1c0] ss:$16 sps:$4 sm:$0xff]   ;;  %v1885_v30 = vld [vmem:[#allocation2 + $0x1c8] ss:$16 sps:$4 sm:$0xff]   ;;  %v1886_v31 = vld [vmem:[#allocation2 + $0x1e4] ss:$16 sps:$4 sm:$0xff]  }
  0x47   : > { %1088 = vmatpush1.bf16.msra.mxu0 %v1836_v59  ;;  %v1888_v32 = vld [vmem:[#allocation2 + $0x1ec] ss:$16 sps:$4 sm:$0xff]   ;;  %v1890_v33 = vld [vmem:[#allocation2 + $0x1e0] ss:$16 sps:$4 sm:$0xff]   ;;  %v1891_v34 = vld [vmem:[#allocation2 + $0x1e8] ss:$16 sps:$4 sm:$0xff]  }
  0x48   : > { %1174 = vmatpush1.bf16.msra.mxu1 %v1837_v60  ;;  %1089 = vmatprep.subr.bf16.mxu0 %v1838_v61  ;;  %v1894_v35 = vld [vmem:[#allocation2 + $0x204] ss:$16 sps:$4 sm:$0xff]   ;;  %v1897_v36 = vld [vmem:[#allocation2 + $0x20c] ss:$16 sps:$4 sm:$0xff]   ;;  %v1892_v40 = vld [vmem:[#allocation2 + $0x200] ss:$16 sps:$4 sm:$0xff]  }
  0x49   : > { %1175 = vmatprep.subr.bf16.mxu1 %v1840_v62  ;;  %v1895_v41 = vld [vmem:[#allocation2 + $0x208] ss:$16 sps:$4 sm:$0xff]   ;;  %v1900_v44 = vld [vmem:[#allocation2 + $0x224] ss:$16 sps:$4 sm:$0xff]   ;;  %v1903_v45 = vld [vmem:[#allocation2 + $0x22c] ss:$16 sps:$4 sm:$0xff]  }
  0x4a   : > { %v1898_v47 = vld [vmem:[#allocation2 + $0x220] ss:$16 sps:$4 sm:$0xff]   ;;  %v1901_v48 = vld [vmem:[#allocation2 + $0x228] ss:$16 sps:$4 sm:$0xff]   ;;  %vm279_vm4 = vcmask 523264   ;;  %vm302_vm5 = vcmask 785408  }
  0x4b   : > { %1090 = vmatpush1.bf16.msra.mxu0 %v1842_v63  ;;  %v1906_v49 = vld [vmem:[#allocation2 + $0x244] ss:$16 sps:$4 sm:$0xff]   ;;  %v1909_v50 = vld [vmem:[#allocation2 + $0x24c] ss:$16 sps:$4 sm:$0xff]   ;;  %v1904_v51 = vld [vmem:[#allocation2 + $0x240] ss:$16 sps:$4 sm:$0xff]  }
  0x4c   : > { %1176 = vmatpush1.bf16.msra.mxu1 %v1843_v0  ;;  %1091 = vmatprep.subr.bf16.mxu0 %v1844_v2  ;;  %v1907_v52 = vld [vmem:[#allocation2 + $0x248] ss:$16 sps:$4 sm:$0xff]   ;;  %v1912_v53 = vld [vmem:[#allocation2 + $0x264] ss:$16 sps:$4 sm:$0xff]   ;;  %v1915_v54 = vld [vmem:[#allocation2 + $0x26c] ss:$16 sps:$4 sm:$0xff]  }
  0x4d   : > { %1177 = vmatprep.subr.bf16.mxu1 %v1846_v3  ;;  %v1910_v56 = vld [vmem:[#allocation2 + $0x260] ss:$16 sps:$4 sm:$0xff]   ;;  %v1913_v57 = vld [vmem:[#allocation2 + $0x268] ss:$16 sps:$4 sm:$0xff]   ;;  %v1918_v58 = vld [vmem:[#allocation2 + $0x284] ss:$16 sps:$4 sm:$0xff]  }
  0x4e   : > { %v1921_v59 = vld [vmem:[#allocation2 + $0x28c] ss:$16 sps:$4 sm:$0xff]   ;;  %v1916_v60 = vld [vmem:[#allocation2 + $0x280] ss:$16 sps:$4 sm:$0xff]   ;;  %v1919_v61 = vld [vmem:[#allocation2 + $0x288] ss:$16 sps:$4 sm:$0xff]  }
  0x4f   : > { %1092 = vmatpush1.bf16.msra.mxu0 %v1848_v5  ;;  %v1924_v62 = vld [vmem:[#allocation2 + $0x2a4] ss:$16 sps:$4 sm:$0xff]   ;;  %v1927_v63 = vld [vmem:[#allocation2 + $0x2ac] ss:$16 sps:$4 sm:$0xff]   ;;  %v1922_v0 = vld [vmem:[#allocation2 + $0x2a0] ss:$16 sps:$4 sm:$0xff]  }
  0x50   : > { %1178 = vmatpush1.bf16.msra.mxu1 %v1849_v6  ;;  %1093 = vmatprep.subr.bf16.mxu0 %v1850_v7  ;;  %v1925_v2 = vld [vmem:[#allocation2 + $0x2a8] ss:$16 sps:$4 sm:$0xff]   ;;  %v1930_v3 = vld [vmem:[#allocation2 + $0x2c4] ss:$16 sps:$4 sm:$0xff]   ;;  %v1933_v5 = vld [vmem:[#allocation2 + $0x2cc] ss:$16 sps:$4 sm:$0xff]  }
  0x51   : > { %1179 = vmatprep.subr.bf16.mxu1 %v1852_v8  ;;  %v1928_v6 = vld [vmem:[#allocation2 + $0x2c0] ss:$16 sps:$4 sm:$0xff]   ;;  %v1931_v7 = vld [vmem:[#allocation2 + $0x2c8] ss:$16 sps:$4 sm:$0xff]   ;;  %v1936_v8 = vld [vmem:[#allocation2 + $0x2e4] ss:$16 sps:$4 sm:$0xff]  }
  0x52   : > { %vm1402_vm6 = vcmask 130048  }
  0x53   : > { %1094 = vmatpush1.bf16.msra.mxu0 %v1854_v9  ;;  %v1939_v9 = vld [vmem:[#allocation2 + $0x2ec] ss:$16 sps:$4 sm:$0xff]  }
  0x54   : > { %1180 = vmatpush1.bf16.msra.mxu1 %v1855_v10  ;;  %1095 = vmatprep.subr.bf16.mxu0 %v1856_v11  ;;  %v1934_v10 = vld [vmem:[#allocation2 + $0x2e0] ss:$16 sps:$4 sm:$0xff]   ;;  %v1937_v11 = vld [vmem:[#allocation2 + $0x2e8] ss:$16 sps:$4 sm:$0xff]  }
  0x55   : > { %1181 = vmatprep.subr.bf16.mxu1 %v1858_v12  ;;  %v1942_v12 = vld [vmem:[#allocation2 + $0x304] ss:$16 sps:$4 sm:$0xff]  }
  0x57   : > { %1096 = vmatpush1.bf16.msra.mxu0 %v1860_v13  ;;  %v1945_v13 = vld [vmem:[#allocation2 + $0x30c] ss:$16 sps:$4 sm:$0xff]  }
  0x58   : > { %1182 = vmatpush1.bf16.msra.mxu1 %v1861_v14  ;;  %1097 = vmatprep.subr.bf16.mxu0 %v1862_v15  ;;  %v1940_v14 = vld [vmem:[#allocation2 + $0x300] ss:$16 sps:$4 sm:$0xff]   ;;  %v1943_v15 = vld [vmem:[#allocation2 + $0x308] ss:$16 sps:$4 sm:$0xff]  }
  0x59   : > { %1183 = vmatprep.subr.bf16.mxu1 %v1864_v16  ;;  %v1948_v16 = vld [vmem:[#allocation2 + $0x324] ss:$16 sps:$4 sm:$0xff]  }
  0x5b   : > { %1098 = vmatpush1.bf16.msra.mxu0 %v1866_v17  ;;  %v1951_v17 = vld [vmem:[#allocation2 + $0x32c] ss:$16 sps:$4 sm:$0xff]  }
  0x5c   : > { %1184 = vmatpush1.bf16.msra.mxu1 %v1867_v18  ;;  %1099 = vmatprep.subr.bf16.mxu0 %v1868_v19  ;;  %v1946_v18 = vld [vmem:[#allocation2 + $0x320] ss:$16 sps:$4 sm:$0xff]   ;;  %v1949_v19 = vld [vmem:[#allocation2 + $0x328] ss:$16 sps:$4 sm:$0xff]  }
  0x5d   : > { %1185 = vmatprep.subr.bf16.mxu1 %v1870_v20  ;;  %v1954_v20 = vld [vmem:[#allocation2 + $0x344] ss:$16 sps:$4 sm:$0xff]  }
  0x5f   : > { %1100 = vmatpush1.bf16.msra.mxu0 %v1872_v21  ;;  %v1957_v21 = vld [vmem:[#allocation2 + $0x34c] ss:$16 sps:$4 sm:$0xff]  }
  0x60   : > { %1186 = vmatpush1.bf16.msra.mxu1 %v1873_v22  ;;  %1101 = vmatprep.subr.bf16.mxu0 %v1874_v23  ;;  %v1952_v22 = vld [vmem:[#allocation2 + $0x340] ss:$16 sps:$4 sm:$0xff]   ;;  %v1955_v23 = vld [vmem:[#allocation2 + $0x348] ss:$16 sps:$4 sm:$0xff]  }
  0x61   : > { %1187 = vmatprep.subr.bf16.mxu1 %v1876_v24  ;;  %v1960_v24 = vld [vmem:[#allocation2 + $0x364] ss:$16 sps:$4 sm:$0xff]  }
  0x63   : > { %1102 = vmatpush1.bf16.msra.mxu0 %v1878_v25  ;;  %v1963_v25 = vld [vmem:[#allocation2 + $0x36c] ss:$16 sps:$4 sm:$0xff]  }
  0x64   : > { %1188 = vmatpush1.bf16.msra.mxu1 %v1879_v26  ;;  %1103 = vmatprep.subr.bf16.mxu0 %v1880_v27  ;;  %v1958_v26 = vld [vmem:[#allocation2 + $0x360] ss:$16 sps:$4 sm:$0xff]   ;;  %v1961_v27 = vld [vmem:[#allocation2 + $0x368] ss:$16 sps:$4 sm:$0xff]  }
  0x65   : > { %1189 = vmatprep.subr.bf16.mxu1 %v1882_v28  ;;  %v1966_v28 = vld [vmem:[#allocation2 + $0x384] ss:$16 sps:$4 sm:$0xff]  }
  0x67   : > { %1104 = vmatpush1.bf16.msra.mxu0 %v1884_v29  ;;  %v1969_v29 = vld [vmem:[#allocation2 + $0x38c] ss:$16 sps:$4 sm:$0xff]  }
  0x68   : > { %1190 = vmatpush1.bf16.msra.mxu1 %v1885_v30  ;;  %1105 = vmatprep.subr.bf16.mxu0 %v1886_v31  ;;  %v1964_v30 = vld [vmem:[#allocation2 + $0x380] ss:$16 sps:$4 sm:$0xff]   ;;  %v1967_v31 = vld [vmem:[#allocation2 + $0x388] ss:$16 sps:$4 sm:$0xff]  }
  0x69   : > { %1191 = vmatprep.subr.bf16.mxu1 %v1888_v32  ;;  %v1972_v32 = vld [vmem:[#allocation2 + $0x3a4] ss:$16 sps:$4 sm:$0xff]  }
  0x6b   : > { %1106 = vmatpush1.bf16.msra.mxu0 %v1890_v33  ;;  %v1975_v33 = vld [vmem:[#allocation2 + $0x3ac] ss:$16 sps:$4 sm:$0xff]  }
  0x6c   : > { %1192 = vmatpush1.bf16.msra.mxu1 %v1891_v34  ;;  %1118 = vmatprep.subr.bf16.mxu0 %v1894_v35  ;;  %v1970_v34 = vld [vmem:[#allocation2 + $0x3a0] ss:$16 sps:$4 sm:$0xff]   ;;  %v1973_v35 = vld [vmem:[#allocation2 + $0x3a8] ss:$16 sps:$4 sm:$0xff]  }
  0x6d   : > { %1204 = vmatprep.subr.bf16.mxu1 %v1897_v36  ;;  %v1978_v36 = vld [vmem:[#allocation2 + $0x3c4] ss:$16 sps:$4 sm:$0xff]  }
  0xaa   : > { %v278_v37 = vpop.permute.xlu1 %277 }
  0xad   : > { %v263_v39 = vpop.permute.xlu0 %262 }
  0xae   : > { %v265_v38 = vpop.permute.xlu1 %264  ;;  %v295_v43 = vsel %vm266_vm3, %v2141_v1, %v263_v39 }
  0xaf   : > { %v2157_v42 = vsel %vm266_vm3, %v263_v39, %v265_v38  ;;  %1107 = vmatprep.mubr.bf16.mxu0 %v295_v43  ;;  %1193 = vmatprep.mubr.bf16.mxu1 %v295_v43  ;;  %v1976_v38 = vld [vmem:[#allocation2 + $0x3c0] ss:$16 sps:$4 sm:$0xff]   ;;  %v1979_v39 = vld [vmem:[#allocation2 + $0x3c8] ss:$16 sps:$4 sm:$0xff]  }
  0xb0   : > { %1108 = vmatmul.mubr.bf16.vlgmr.msra.gmra.mrb[0].mxu0 %v2143_v4  ;;  %1194 = vmatmul.mubr.bf16.vlgmr.msra.gmra.mrb[0].mxu1 %v2143_v4  ;;  %v1275_v43 = vld [vmem:[%s2288_s2 + $0x80] sm:$0xff] }
  0xb1   : > { %1119 = vmatpush1.bf16.msra.mxu0 %v1892_v40  ;;  %1205 = vmatpush1.bf16.msra.mxu1 %v1895_v41  ;;  %v2162_v46 = vpop.permute.xlu0 %275  ;;  %v1984_v40 = vld [vmem:[#allocation2 + $0x3e4] ss:$16 sps:$4 sm:$0xff]   ;;  %v1987_v41 = vld [vmem:[#allocation2 + $0x3ec] ss:$16 sps:$4 sm:$0xff]  }
  0xb2   : > { %1120 = vmatprep.subr.bf16.mxu0 %v1900_v44  ;;  %1206 = vmatprep.subr.bf16.mxu1 %v1903_v45  ;;  %v280_v1 = vsel %vm279_vm4, %v2162_v46, %v278_v37  ;;  %v1981_v37 = vld [vmem:[#allocation2 + $0x3cc] ss:$16 sps:$4 sm:$0xff]   ;;  %v1982_v45 = vld [vmem:[#allocation2 + $0x3e0] ss:$16 sps:$4 sm:$0xff]  }
  0xb3   : > { %v1276_v44 = vld [vmem:[%s2288_s2 + $0x88] sm:$0xff] }
  0xb5   : > { %1121 = vmatpush1.bf16.msra.mxu0 %v1898_v47  ;;  %1207 = vmatpush1.bf16.msra.mxu1 %v1901_v48  ;;  %v292_v4 = vpop.permute.xlu0 %291  ;;  %v1985_v47 = vld [vmem:[#allocation2 + $0x3e8] ss:$16 sps:$4 sm:$0xff]   ;;  %v1693_v48 = vpack.c.bf16 %v1276_v44, %v1275_v43 }
  0xb6   : > { %1122 = vmatprep.subr.bf16.mxu0 %v1906_v49  ;;  %1208 = vmatprep.subr.bf16.mxu1 %v1909_v50  ;;  %v305_v55 = vsel %vm302_vm5, %v280_v1, %v292_v4  ;;  %v1259_v49 = vld [vmem:[%s2288_s2] sm:$0xff]  ;;  %v1260_v50 = vld [vmem:[%s2288_s2 + $0x8] sm:$0xff]  ;;  %v1277_v1 = vld [vmem:[%s2288_s2 + $0x90] sm:$0xff] }
  0xb7   : > { %1150 = vmatprep.mubr.bf16.mxu0 %v305_v55  ;;  %1236 = vmatprep.mubr.bf16.mxu1 %v305_v55  ;;  %v300_v55 = vsel %vm279_vm4, %v2157_v42, %v2162_v46  ;;  %v1263_v42 = vld [vmem:[%s2288_s2 + $0x20] sm:$0xff]  ;;  %v1264_v46 = vld [vmem:[%s2288_s2 + $0x28] sm:$0xff] }
  0xb9   : > { %1123 = vmatpush1.bf16.msra.mxu0 %v1904_v51  ;;  %1209 = vmatpush1.bf16.msra.mxu1 %v1907_v52  ;;  %v1278_v51 = vld [vmem:[%s2288_s2 + $0x98] sm:$0xff]  ;;  %v1695_v52 = vpack.c.bf16 %v1260_v50, %v1259_v49 }
  0xba   : > { %1124 = vmatprep.subr.bf16.mxu0 %v1912_v53  ;;  %1210 = vmatprep.subr.bf16.mxu1 %v1915_v54  ;;  %v1697_v4 = vpack.c.bf16 %v1278_v51, %v1277_v1  ;;  %v1261_v53 = vld [vmem:[%s2288_s2 + $0x10] sm:$0xff]  ;;  %v1262_v54 = vld [vmem:[%s2288_s2 + $0x18] sm:$0xff] }
  0xbd   : > { %1125 = vmatpush1.bf16.msra.mxu0 %v1910_v56  ;;  %1211 = vmatpush1.bf16.msra.mxu1 %v1913_v57  ;;  %v1279_v56 = vld [vmem:[%s2288_s2 + $0xa0] sm:$0xff]  ;;  %v1280_v57 = vld [vmem:[%s2288_s2 + $0xa8] sm:$0xff] }
  0xbe   : > { %1126 = vmatprep.subr.bf16.mxu0 %v1918_v58  ;;  %1212 = vmatprep.subr.bf16.mxu1 %v1921_v59  ;;  %v1699_v58 = vpack.c.bf16 %v1262_v54, %v1261_v53  ;;  %v1701_v59 = vpack.c.bf16 %v1280_v57, %v1279_v56 }
  0xc1   : > { %1127 = vmatpush1.bf16.msra.mxu0 %v1916_v60  ;;  %1213 = vmatpush1.bf16.msra.mxu1 %v1919_v61  ;;  %v1281_v60 = vld [vmem:[%s2288_s2 + $0xb0] sm:$0xff]  ;;  %v1282_v61 = vld [vmem:[%s2288_s2 + $0xb8] sm:$0xff] }
  0xc2   : > { %1128 = vmatprep.subr.bf16.mxu0 %v1924_v62  ;;  %1214 = vmatprep.subr.bf16.mxu1 %v1927_v63  ;;  %v1703_v62 = vpack.c.bf16 %v1264_v46, %v1263_v42  ;;  %v1705_v63 = vpack.c.bf16 %v1282_v61, %v1281_v60 }
  0xc5   : > { %1129 = vmatpush1.bf16.msra.mxu0 %v1922_v0  ;;  %1215 = vmatpush1.bf16.msra.mxu1 %v1925_v2  ;;  %v1265_v0 = vld [vmem:[%s2288_s2 + $0x30] sm:$0xff]  ;;  %v1266_v2 = vld [vmem:[%s2288_s2 + $0x38] sm:$0xff] }
  0xc6   : > { %1130 = vmatprep.subr.bf16.mxu0 %v1930_v3  ;;  %1216 = vmatprep.subr.bf16.mxu1 %v1933_v5  ;;  %v1283_v3 = vld [vmem:[%s2288_s2 + $0xc0] sm:$0xff]  ;;  %v1284_v5 = vld [vmem:[%s2288_s2 + $0xc8] sm:$0xff] }
  0xc9   : > { %1131 = vmatpush1.bf16.msra.mxu0 %v1928_v6  ;;  %1217 = vmatpush1.bf16.msra.mxu1 %v1931_v7  ;;  %v1707_v6 = vpack.c.bf16 %v1266_v2, %v1265_v0  ;;  %v1709_v7 = vpack.c.bf16 %v1284_v5, %v1283_v3 }
  0xca   : > { %1132 = vmatprep.subr.bf16.mxu0 %v1936_v8  ;;  %1218 = vmatprep.subr.bf16.mxu1 %v1939_v9  ;;  %v1267_v8 = vld [vmem:[%s2288_s2 + $0x40] sm:$0xff]  ;;  %v1268_v9 = vld [vmem:[%s2288_s2 + $0x48] sm:$0xff] }
  0xcd   : > { %1133 = vmatpush1.bf16.msra.mxu0 %v1934_v10  ;;  %1219 = vmatpush1.bf16.msra.mxu1 %v1937_v11  ;;  %v1285_v10 = vld [vmem:[%s2288_s2 + $0xd0] sm:$0xff]  ;;  %v1286_v11 = vld [vmem:[%s2288_s2 + $0xd8] sm:$0xff] }
  0xce   : > { %1134 = vmatprep.subr.bf16.mxu0 %v1942_v12  ;;  %1220 = vmatprep.subr.bf16.mxu1 %v1945_v13  ;;  %v1711_v12 = vpack.c.bf16 %v1268_v9, %v1267_v8  ;;  %v1713_v13 = vpack.c.bf16 %v1286_v11, %v1285_v10 }
  0xd1   : > { %1135 = vmatpush1.bf16.msra.mxu0 %v1940_v14  ;;  %1221 = vmatpush1.bf16.msra.mxu1 %v1943_v15  ;;  %v1269_v14 = vld [vmem:[%s2288_s2 + $0x50] sm:$0xff]  ;;  %v1270_v15 = vld [vmem:[%s2288_s2 + $0x58] sm:$0xff] }
  0xd2   : > { %1136 = vmatprep.subr.bf16.mxu0 %v1948_v16  ;;  %1222 = vmatprep.subr.bf16.mxu1 %v1951_v17  ;;  %v1287_v16 = vld [vmem:[%s2288_s2 + $0xe0] sm:$0xff]  ;;  %v1288_v17 = vld [vmem:[%s2288_s2 + $0xe8] sm:$0xff] }
  0xd5   : > { %1137 = vmatpush1.bf16.msra.mxu0 %v1946_v18  ;;  %1223 = vmatpush1.bf16.msra.mxu1 %v1949_v19  ;;  %v1715_v18 = vpack.c.bf16 %v1270_v15, %v1269_v14  ;;  %v1717_v19 = vpack.c.bf16 %v1288_v17, %v1287_v16 }
  0xd6   : > { %1138 = vmatprep.subr.bf16.mxu0 %v1954_v20  ;;  %1224 = vmatprep.subr.bf16.mxu1 %v1957_v21  ;;  %v1271_v20 = vld [vmem:[%s2288_s2 + $0x60] sm:$0xff]  ;;  %v1272_v21 = vld [vmem:[%s2288_s2 + $0x68] sm:$0xff] }
  0xd9   : > { %1139 = vmatpush1.bf16.msra.mxu0 %v1952_v22  ;;  %1225 = vmatpush1.bf16.msra.mxu1 %v1955_v23  ;;  %v1719_v22 = vpack.c.bf16 %v1272_v21, %v1271_v20  ;;  %v1289_v23 = vld [vmem:[%s2288_s2 + $0xf0] sm:$0xff] }
  0xda   : > { %1140 = vmatprep.subr.bf16.mxu0 %v1960_v24  ;;  %1226 = vmatprep.subr.bf16.mxu1 %v1963_v25  ;;  %v1290_v24 = vld [vmem:[%s2288_s2 + $0xf8] sm:$0xff] }
  0xdb   : > { %v1721_v25 = vpack.c.bf16 %v1290_v24, %v1289_v23 }
  0xdd   : > { %1141 = vmatpush1.bf16.msra.mxu0 %v1958_v26  ;;  %1227 = vmatpush1.bf16.msra.mxu1 %v1961_v27  ;;  %v1273_v26 = vld [vmem:[%s2288_s2 + $0x70] sm:$0xff]  ;;  %v1274_v27 = vld [vmem:[%s2288_s2 + $0x78] sm:$0xff] }
  0xde   : > { %1142 = vmatprep.subr.bf16.mxu0 %v1966_v28  ;;  %1228 = vmatprep.subr.bf16.mxu1 %v1969_v29  ;;  %v1723_v28 = vpack.c.bf16 %v1274_v27, %v1273_v26 }
  0xe1   : > { %1143 = vmatpush1.bf16.msra.mxu0 %v1964_v30  ;;  %1229 = vmatpush1.bf16.msra.mxu1 %v1967_v31 }
  0xe2   : > { %1144 = vmatprep.subr.bf16.mxu0 %v1972_v32  ;;  %1230 = vmatprep.subr.bf16.mxu1 %v1975_v33 }
  0xe5   : > { %1145 = vmatpush1.bf16.msra.mxu0 %v1970_v34  ;;  %1231 = vmatpush1.bf16.msra.mxu1 %v1973_v35 }
  0xe6   : > { %1146 = vmatprep.subr.bf16.mxu0 %v1978_v36  ;;  %1232 = vmatprep.subr.bf16.mxu1 %v1981_v37 }
  0xe9   : > { %1147 = vmatpush1.bf16.msra.mxu0 %v1976_v38  ;;  %1233 = vmatpush1.bf16.msra.mxu1 %v1979_v39 }
  0xea   : > { %1148 = vmatprep.subr.bf16.mxu0 %v1984_v40  ;;  %1234 = vmatprep.subr.bf16.mxu1 %v1987_v41 }
  0xed   : > { %1149 = vmatpush1.bf16.msra.mxu0 %v1982_v45  ;;  %1235 = vmatpush1.bf16.msra.mxu1 %v1985_v47 }
  0xee   : > { %1694 = vmatprep.subr.bf16.mxu0 %v1693_v48  ;;  %1725 = vmatprep.subr.bf16.mxu1 %v1693_v48 }
  0xf0   : > { %1151 = vmatmul.mubr.bf16.vlgmr.msra.gmra.mrb[0].mxu0 %v300_v55  ;;  %1237 = vmatmul.mubr.bf16.vlgmr.msra.gmra.mrb[0].mxu1 %v300_v55 }
  0xf1   : > { %1696 = vmatpush3.bf16.msra.mxu0 %v1695_v52  ;;  %1733 = vmatpush3.bf16.msra.mxu1 %v1695_v52 }
  0xf2   : > { %1698 = vmatprep.subr.bf16.mxu0 %v1697_v4  ;;  %1726 = vmatprep.subr.bf16.mxu1 %v1697_v4 }
  0xf5   : > { %1700 = vmatpush3.bf16.msra.mxu0 %v1699_v58  ;;  %1734 = vmatpush3.bf16.msra.mxu1 %v1699_v58 }
  0xf6   : > { %1702 = vmatprep.subr.bf16.mxu0 %v1701_v59  ;;  %1727 = vmatprep.subr.bf16.mxu1 %v1701_v59 }
  0xf9   : > { %1704 = vmatpush3.bf16.msra.mxu0 %v1703_v62  ;;  %1735 = vmatpush3.bf16.msra.mxu1 %v1703_v62 }
  0xfa   : > { %1706 = vmatprep.subr.bf16.mxu0 %v1705_v63  ;;  %1728 = vmatprep.subr.bf16.mxu1 %v1705_v63 }
  0xfd   : > { %1708 = vmatpush3.bf16.msra.mxu0 %v1707_v6  ;;  %1736 = vmatpush3.bf16.msra.mxu1 %v1707_v6 }
  0xfe   : > { %1710 = vmatprep.subr.bf16.mxu0 %v1709_v7  ;;  %1729 = vmatprep.subr.bf16.mxu1 %v1709_v7 }
 0x101   : > { %1712 = vmatpush3.bf16.msra.mxu0 %v1711_v12  ;;  %1737 = vmatpush3.bf16.msra.mxu1 %v1711_v12 }
 0x102   : > { %1714 = vmatprep.subr.bf16.mxu0 %v1713_v13  ;;  %1730 = vmatprep.subr.bf16.mxu1 %v1713_v13 }
 0x105   : > { %1716 = vmatpush3.bf16.msra.mxu0 %v1715_v18  ;;  %1738 = vmatpush3.bf16.msra.mxu1 %v1715_v18 }
 0x106   : > { %1718 = vmatprep.subr.bf16.mxu0 %v1717_v19  ;;  %1731 = vmatprep.subr.bf16.mxu1 %v1717_v19 }
 0x109   : > { %1720 = vmatpush3.bf16.msra.mxu0 %v1719_v22  ;;  %1739 = vmatpush3.bf16.msra.mxu1 %v1719_v22 }
 0x10a   : > { %1722 = vmatprep.subr.bf16.mxu0 %v1721_v25  ;;  %1732 = vmatprep.subr.bf16.mxu1 %v1721_v25 }
 0x10d   : > { %1724 = vmatpush3.bf16.msra.mxu0 %v1723_v28  ;;  %1740 = vmatpush3.bf16.msra.mxu1 %v1723_v28 }
 0x1c3   : > { %v1152_v29 = vpop.f32.mrb[0].mxu0  ;;  %v1238_v30 = vpop.f32.mrb[0].mxu1 }
 0x1c4   : > { %v1247_v31 = vmul.f32 %v1152_v29, %v1152_v29  ;;  %v1251_v32 = vmul.f32 %v1238_v30, %v1238_v30  ;;  %v1154_v33 = vpop.f32.mrb[1].mxu0  ;;  %v1240_v34 = vpop.f32.mrb[1].mxu1 }
 0x1c5   : > { %v1248_v35 = vmul.f32 %v1154_v33, %v1154_v33  ;;  %v1252_v36 = vmul.f32 %v1240_v34, %v1240_v34  ;;  %v1156_v37 = vpop.f32.mrb[2].mxu0  ;;  %v1242_v38 = vpop.f32.mrb[2].mxu1 }
 0x1c6   : > { %v1255_v39 = vadd.f32 %v1251_v32, %v1247_v31  ;;  %v1249_v40 = vmul.f32 %v1156_v37, %v1156_v37  ;;  %v1253_v41 = vmul.f32 %v1242_v38, %v1242_v38  ;;  %v1158_v43 = vpop.f32.mrb[3].mxu0  ;;  %v1244_v44 = vpop.f32.mrb[3].mxu1 }
 0x1c7   : > { %v1256_v45 = vadd.f32 %v1252_v36, %v1248_v35  ;;  %v1250_v47 = vmul.f32 %v1158_v43, %v1158_v43  ;;  %v1254_v48 = vmul.f32 %v1244_v44, %v1244_v44 }
 0x1c8   : > { %v1257_v49 = vadd.f32 %v1253_v41, %v1249_v40 }
 0x1c9   : > { %v1258_v50 = vadd.f32 %v1254_v48, %v1250_v47  ;;  %1355 = vmatprep.mubr.f32.mxu0 %v1256_v45 }
 0x1ca   : > { %1356 = vmatmul.mubr.f32.vlgmr.msra.gmra.mrb[4].mxu0 %v1255_v39 }
 0x1cb   : > { %1360 = vmatprep.mubr.f32.mxu1 %v1258_v50 }
 0x1cc   : > { %1361 = vmatmul.mubr.f32.vlgmr.msra.gmra.mrb[4].mxu1 %v1257_v49 }
 0x29d   : > { %v1687_v1 = vpop.f32.mrb[4].mxu0 }
 0x29e   : > { %v1688_v51 = vpop.f32.mrb[5].mxu0 }
 0x29f   : > { %v1689_v52 = vadd.f32 %v1688_v51, %v1687_v1  ;;  %v1690_v4 = vpop.f32.mrb[4].mxu1 }
 0x2a0   : > { %v1691_v53 = vpop.f32.mrb[5].mxu1 }
 0x2a1   : > { %v1358_v54 = vadd.f32 1e-06, %v1689_v52  ;;  %v1692_v55 = vadd.f32 %v1691_v53, %v1690_v4 }
 0x2a3   : > { %1988 = vlog2.f32 %v1358_v54  ;;  %v1363_v56 = vadd.f32 1e-06, %v1692_v55 }
 0x2a5   : > { %1990 = vlog2.f32 %v1363_v56 }
 0x2ad   : > { %v1989_v57 = vpop.eup %1988 }
 0x2ae   : > { %v1367_v58 = vmul.f32 0.6931472, %v1989_v57 }
 0x2af   : > { %v1991_v59 = vpop.eup %1990 }
 0x2b0   : > { %1370 = vxpose.xlu1.b32.start [1/2] (short) (narrow) %v1367_v58, 64  ;;  %v1369_v42 = vmul.f32 0.6931472, %v1991_v59 }
 0x2b4   : > { %1371 = vxpose.xlu1.b32.end [2/2] (short) (narrow) %v1369_v42, 64 }
 0x330   : > { %v1386_v46 = vpop.trf.xlu1 }
 0x331   : > { %1403 = vst.msk [vmem:[%s219_s15] sm:$0xff] %vm1402_vm6, %v1386_v46 }
 0x334   : > { %v1387_v60 = vpop.trf.xlu1 }
 0x335   : > { %1404 = vst.msk [vmem:[%s219_s15 + $0x8] sm:$0xff] %vm1402_vm6, %v1387_v60 }
 0x338   : > { %v1388_v61 = vpop.trf.xlu1 }
 0x339   : > { %1405 = vst.msk [vmem:[%s219_s15 + $0x10] sm:$0xff] %vm1402_vm6, %v1388_v61 }
 0x33c   : > { %v1389_v62 = vpop.trf.xlu1 }
 0x33d   : > { %1406 = vst.msk [vmem:[%s219_s15 + $0x18] sm:$0xff] %vm1402_vm6, %v1389_v62 }
 0x340   : > { %v1390_v63 = vpop.trf.xlu1 }
 0x341   : > { %1407 = vst.msk [vmem:[%s219_s15 + $0x20] sm:$0xff] %vm1402_vm6, %v1390_v63 }
 0x344   : > { %v1391_v0 = vpop.trf.xlu1 }
 0x345   : > { %1408 = vst.msk [vmem:[%s219_s15 + $0x28] sm:$0xff] %vm1402_vm6, %v1391_v0 }
 0x348   : > { %v1392_v2 = vpop.trf.xlu1 }
 0x349   : > { %1409 = vst.msk [vmem:[%s219_s15 + $0x30] sm:$0xff] %vm1402_vm6, %v1392_v2 }
 0x34c   : > { %v1393_v3 = vpop.trf.xlu1 }
 0x34d   : > { %1410 = vst.msk [vmem:[%s219_s15 + $0x38] sm:$0xff] %vm1402_vm6, %v1393_v3 }
 0x34e PF: > { %s14_s14 = sadd.s32 1, %s2046_s14   ;;  %s2298_s12 = smov %s2042_s13 }
 0x34f   : > { %p11_p4 = scmp.ge.s32.totalorder %s14_s14, 4   ;;  %s2299_s13 = smov %s2301_s16 }
 0x351   :  { %13 = sbr.rel (!%p11_p4) target bundleno = 2 (0x2), region = 67 }
 0x358   :  { %1438 = vsyncpa [#allocation3], 1 }
 0x359   :  { %1440 = vsyncpa [#allocation3 + $0x1], 1 }

</bundles_post_ra>
